<compile_context>
chip_gen: v7x
topology: tpu7x:2x2x1
jax: 0.10.0
libtpu: 0.0.40
codegen_flags: <defaults>
</compile_context>

<pallas_src>
import functools
import numpy as np
import jax
import jax.numpy as jnp
from jax import lax
from jax.experimental import pallas as pl
from jax.experimental.pallas import tpu as pltpu


_VMEM_LIMIT = 32 * 1024 * 1024   # safe on v7x (64 MiB physical); row tiling keeps us far below


def _rup(x, m):
    return ((x + m - 1) // m) * m


# ----------------------------------------------------------------------------
# Fused kernel: conv3x3(+bias) -> Space2Depth(2) -> 1x1+ReLU -> 1x1+ReLU -> 1x1
# ----------------------------------------------------------------------------
def _hyper_encoder_kernel(xm_ref, xh_ref, w0_ref, b0_ref, w1_ref, b1_ref,
                          w2_ref, b2_ref, w3_ref, b3_ref, o_ref):
    t_r, ow2, c3p = o_ref.shape          # batch dim squeezed
    kc = xm_ref.shape[-1]                # 4 * Cin  (width-window channels)
    c0p = w0_ref.shape[-1]
    c2p = w2_ref.shape[0]
    m_conv = 2 * t_r * ow2               # conv-output rows in this tile (pre-s2d)
    m_out = t_r * ow2                    # s2d / chain rows in this tile

    # main rows (2*t_r) + 2-row halo -> contiguous (2*t_r + 2)-row window, leading dim
    xw = jnp.concatenate([xm_ref[...], xh_ref[...]], axis=0)     # (2*t_r+2, ow2, kc) bf16

    # 3x3 conv, stride 1.  Width taps are pre-folded into the kc = 4*Cin window, so each
    # ky tap is a *leading-dim* slice (free) + one K = 4*Cin matmul per column parity.
    xk = [xw[ky:ky + 2 * t_r].reshape(m_conv, kc) for ky in range(3)]

    ys = []
    for rx in range(2):                  # output-column parity (W half of Space2Depth)
        acc = jnp.zeros((m_conv, c0p), jnp.float32)
        for ky in range(3):
            acc = acc + jnp.dot(xk[ky], w0_ref[rx, ky],
                                preferred_element_type=jnp.float32)
        y = (acc + b0_ref[...]).astype(jnp.bfloat16)
        # rows are ordered (conv_row, w2); split conv_row = 2*r + ry (leading-dim, free)
        ys.append(y.reshape(t_r, 2, ow2, c0p))

    # Space2Depth(2) + first 1x1 conv: channel block q = ry*2 + rx of the torch permute
    acc1 = jnp.zeros((m_out, c2p), jnp.float32)
    for ry in range(2):
        for rx in range(2):
            z = ys[rx][:, ry].reshape(m_out, c0p)
            acc1 = acc1 + jnp.dot(z, w1_ref[ry * 2 + rx],
                                  preferred_element_type=jnp.float32)

    h = jnp.maximum(acc1 + b1_ref[...], 0.0).astype(jnp.bfloat16)
    h = jnp.dot(h, w2_ref[...], preferred_element_type=jnp.float32) + b2_ref[...]
    h = jnp.maximum(h, 0.0).astype(jnp.bfloat16)
    o = jnp.dot(h, w3_ref[...], preferred_element_type=jnp.float32) + b3_ref[...]
    o_ref[...] = o.reshape(t_r, ow2, c3p).astype(o_ref.dtype)


# ----------------------------------------------------------------------------
# Host-side helpers
# ----------------------------------------------------------------------------
def _pick_row_tile(oh2, ow2, batch):
    """Largest divisor of oh2 giving <= ~512 output positions per grid step; keep >= 2
    grid blocks when batch == 1 so both v7x TensorCores get work."""
    target = max(1, 512 // max(ow2, 1))
    t = 1
    for cand in range(1, oh2 + 1):
        if oh2 % cand == 0 and cand <= target:
            t = cand
    if batch == 1 and t == oh2 and oh2 > 1:
        for cand in range(oh2 - 1, 0, -1):
            if oh2 % cand == 0:
                t = cand
                break
    return t


def _prepare_weights(params, cin):
    """Torch-layout conv weights -> kernel layouts (bf16 MXU operands, f32 biases).

    Conv3x3 weights are regrouped per (output-column-parity rx, row-tap ky) into
    (4*Cin, f0) matrices that match the x_wide window layout; the 1x1 weights become
    plain (in, out) matmul matrices.  Channel dims padded to multiples of 128 on the
    weight/output side only (padded activation channels stay exactly zero end-to-end).
    """
    f32 = jnp.float32
    w0 = jnp.asarray(params['c0_w'], f32)                        # (f0, cin, 3, 3)
    b0 = jnp.asarray(params['c0_b'], f32)
    f0 = w0.shape[0]
    w1 = jnp.asarray(params['c1_w'], f32).reshape(-1, 4 * f0)    # (f1, 4*f0)
    b1 = jnp.asarray(params['c1_b'], f32)
    f1 = w1.shape[0]
    w2 = jnp.asarray(params['c2_w'], f32).reshape(f1, f1)        # (f1, f1)
    b2 = jnp.asarray(params['c2_b'], f32)
    w3 = jnp.asarray(params['c3_w'], f32).reshape(-1, f1)        # (f2, f1)
    b3 = jnp.asarray(params['c3_b'], f32)
    f2 = w3.shape[0]

    c0p, c2p, c3p = _rup(f0, 128), _rup(f1, 128), _rup(f2, 128)

    # (2, 3, 4*cin, c0p): row block j = rx + kx holds W0[:, :, ky, kx]^T, zeros elsewhere
    zero_blk = jnp.zeros((cin, f0), f32)
    per_rx = []
    for rx in range(2):
        per_ky = []
        for ky in range(3):
            blocks = []
            for j in range(4):
                kx = j - rx
                blocks.append(jnp.transpose(w0[:, :, ky, kx]) if 0 <= kx <= 2 else zero_blk)
            per_ky.append(jnp.concatenate(blocks, axis=0))       # (4*cin, f0)
        per_rx.append(jnp.stack(per_ky))                          # (3, 4*cin, f0)
    w0k = jnp.stack(per_rx)                                       # (2, 3, 4*cin, f0)
    w0k = jnp.pad(w0k, ((0, 0), (0, 0), (0, 0), (0, c0p - f0))).astype(jnp.bfloat16)
    b0k = jnp.pad(b0, (0, c0p - f0)).reshape(1, c0p)

    # (4, c0p, c2p): q = ry*2 + rx channel blocks of the first 1x1 conv (torch s2d order)
    w1k = w1.reshape(f1, 4, f0).transpose(1, 2, 0)                # (4, f0, f1) = [q, o, m]
    w1k = jnp.pad(w1k, ((0, 0), (0, c0p - f0), (0, c2p - f1))).astype(jnp.bfloat16)
    b1k = jnp.pad(b1, (0, c2p - f1)).reshape(1, c2p)

    w2k = jnp.pad(w2.T, ((0, c2p - f1), (0, c2p - f1))).astype(jnp.bfloat16)
    b2k = jnp.pad(b2, (0, c2p - f1)).reshape(1, c2p)
    w3k = jnp.pad(w3.T, ((0, c2p - f1), (0, c3p - f2))).astype(jnp.bfloat16)
    b3k = jnp.pad(b3, (0, c3p - f2)).reshape(1, c3p)

    dims = dict(f0=f0, f1=f1, f2=f2, c0p=c0p, c2p=c2p, c3p=c3p)
    return (w0k, b0k, w1k, b1k, w2k, b2k, w3k, b3k), dims


# ----------------------------------------------------------------------------
# Module forward: h_analysisTransformModel
# ----------------------------------------------------------------------------
def h_analysis_transform(params, x_nchw, strides_list):
    """x: (B, in_dim, H, W) f32 -> (B, f2, H//2, W//2) f32."""
    s0, s1 = int(strides_list[0]), int(strides_list[1])
    # TODO(synk): only the reference strides (1, 1) are implemented; s0/s1 > 1 would
    # need a strided x_wide window construction (not used by this module configuration).
    if s0 != 1 or s1 != 1:
        raise NotImplementedError("Pallas h_analysis_transform supports strides (1, 1) only")

    B, cin, H, W = x_nchw.shape
    assert H % 2 == 0 and W % 2 == 0, "Space2Depth(2) requires even spatial dims"
    oh2, ow2 = H // 2, W // 2
    hp = H + 2
    kc = 4 * cin

    weights, dims = _prepare_weights(params, cin)
    c0p, c2p, c3p, f2 = dims['c0p'], dims['c2p'], dims['c3p'], dims['f2']

    # NCHW -> NHWC, zero-pad H/W by 1 (conv padding), cast to bf16 once.
    x = jnp.transpose(x_nchw, (0, 2, 3, 1)).astype(jnp.bfloat16)
    xp = jnp.pad(x, ((0, 0), (1, 1), (1, 1), (0, 0)))                       # (B, H+2, W+2, cin)

    # Width-window rearrangement (the only HBM-side prep, ~2x input bytes):
    #   x_wide[b, h, w2, j*cin + c] = xp[b, h, 2*w2 + j, c],  j = 0..3
    xa = xp[:, :, 0:2 * ow2, :].reshape(B, hp, ow2, 2 * cin)
    xb = xp[:, :, 2:2 * ow2 + 2, :].reshape(B, hp, ow2, 2 * cin)
    x_wide = jnp.concatenate([xa, xb], axis=-1)                             # (B, hp, ow2, 4*cin)

    t_r = _pick_row_tile(oh2, ow2, B)
    n_rt = oh2 // t_r

    macs = B * oh2 * ow2 * (12 * kc * c0p + 4 * c0p * c2p + c2p * c2p + c2p * c3p)
    bytes_accessed = (x_wide.size * 2
                      + sum(w.size * w.dtype.itemsize for w in weights)
                      + B * oh2 * ow2 * c3p * 4)

    out = pl.pallas_call(
        _hyper_encoder_kernel,
        out_shape=jax.ShapeDtypeStruct((B, oh2, ow2, c3p), jnp.float32),
        grid_spec=pltpu.PrefetchScalarGridSpec(
            num_scalar_prefetch=0,
            grid=(B, n_rt),
            in_specs=[
                # main row block: padded-input rows [2*t_r*i, 2*t_r*(i+1))
                pl.BlockSpec((None, 2 * t_r, ow2, kc), lambda b, i: (b, i, 0, 0)),
                # 2-row halo: padded-input rows [2*t_r*(i+1), 2*t_r*(i+1) + 2)
                pl.BlockSpec((None, 2, ow2, kc), lambda b, i: (b, t_r * (i + 1), 0, 0)),
                pl.BlockSpec((2, 3, kc, c0p), lambda b, i: (0, 0, 0, 0)),
                pl.BlockSpec((1, c0p), lambda b, i: (0, 0)),
                pl.BlockSpec((4, c0p, c2p), lambda b, i: (0, 0, 0)),
                pl.BlockSpec((1, c2p), lambda b, i: (0, 0)),
                pl.BlockSpec((c2p, c2p), lambda b, i: (0, 0)),
                pl.BlockSpec((1, c2p), lambda b, i: (0, 0)),
                pl.BlockSpec((c2p, c3p), lambda b, i: (0, 0)),
                pl.BlockSpec((1, c3p), lambda b, i: (0, 0)),
            ],
            out_specs=pl.BlockSpec((None, t_r, ow2, c3p), lambda b, i: (b, i, 0, 0)),
        ),
        compiler_params=pltpu.CompilerParams(
            dimension_semantics=("parallel", "parallel"),
            vmem_limit_bytes=_VMEM_LIMIT),
        cost_estimate=pl.CostEstimate(flops=int(2 * macs), transcendentals=0,
                                      bytes_accessed=int(bytes_accessed)),
    )(x_wide, x_wide, *weights)

    out = out[..., :f2] if c3p != f2 else out
    return jnp.transpose(out, (0, 3, 1, 2))                                 # NHWC -> NCHW


# ----------------------------------------------------------------------------
# Pure-JAX f32 reference (correctness check)
# ----------------------------------------------------------------------------
def _reference_forward(params, x, strides_list):
    dn = ('NCHW', 'OIHW', 'NCHW')
    s0, s1 = strides_list[0], strides_list[1]
    y = lax.conv_general_dilated(x, params['c0_w'], (s0, s0), ((1, 1), (1, 1)),
                                 dimension_numbers=dn) + params['c0_b'][None, :, None, None]
    b, c, h, w = y.shape
    y = (y.reshape(b, c, h // 2, 2, w // 2, 2)
          .transpose(0, 3, 5, 1, 2, 4)
          .reshape(b, c * 4, h // 2, w // 2))
    y = lax.conv_general_dilated(y, params['c1_w'], (s1, s1), ((0, 0), (0, 0)),
                                 dimension_numbers=dn) + params['c1_b'][None, :, None, None]
    y = jnp.maximum(y, 0.0)
    y = lax.conv_general_dilated(y, params['c2_w'], (1, 1), ((0, 0), (0, 0)),
                                 dimension_numbers=dn) + params['c2_b'][None, :, None, None]
    y = jnp.maximum(y, 0.0)
    y = lax.conv_general_dilated(y, params['c3_w'], (1, 1), ((0, 0), (0, 0)),
                                 dimension_numbers=dn) + params['c3_b'][None, :, None, None]
    return y


# ----------------------------------------------------------------------------
# Deterministic synthetic parameters (PyTorch default-init bounds)
# ----------------------------------------------------------------------------
def init_params(key, in_dim, num_filters):
    f0, f1, f2 = num_filters
    keys = jax.random.split(key, 8)

    def conv_p(kw_, kb_, cout, cin, k):
        bound = 1.0 / np.sqrt(cin * k * k)
        w = jax.random.uniform(kw_, (cout, cin, k, k), jnp.float32, -bound, bound)
        b = jax.random.uniform(kb_, (cout,), jnp.float32, -bound, bound)
        return w, b

    p = {}
    p['c0_w'], p['c0_b'] = conv_p(keys[0], keys[1], f0, in_dim, 3)
    p['c1_w'], p['c1_b'] = conv_p(keys[2], keys[3], f1, f0 * 4, 1)
    p['c2_w'], p['c2_b'] = conv_p(keys[4], keys[5], f1, f1, 1)
    p['c3_w'], p['c3_b'] = conv_p(keys[6], keys[7], f2, f1, 1)
    return p


# ----------------------------------------------------------------------------
if __name__ == "__main__":
    key = jax.random.PRNGKey(0)
    k_p, k_x = jax.random.split(key)

    in_dim = 4
    num_filters = (8, 32, 16)
    strides_list = (1, 1, 1)       # only indices 0 and 1 are used by the module
    B, H, W = 2, 16, 16

    params = init_params(k_p, in_dim, num_filters)
    x = jax.random.uniform(k_x, (B, in_dim, H, W), jnp.float32, -1.0, 1.0)

    fwd = jax.jit(functools.partial(h_analysis_transform, strides_list=strides_list))
    out = jax.block_until_ready(fwd(params, x))

    assert out.shape == (B, num_filters[2], H // 2, W // 2), out.shape
    assert np.all(np.isfinite(np.asarray(out)))

    ref = _reference_forward(params, x, strides_list)
    err = float(jnp.max(jnp.abs(out - ref)))
    assert err < 3e-2, f"max abs error vs f32 reference too large: {err}"

    print("KERNEL_OK")
</pallas_src>

<mosaic_0001>
module attributes {stable_mosaic.version = 11 : i64} {
  func.func @_hyper_encoder_kernel(%arg0: i32, %arg1: i32, %arg2: memref<1x16x8x16xbf16, #tpu.memory_space<vmem>>, %arg3: memref<1x2x8x16xbf16, #tpu.memory_space<vmem>>, %arg4: memref<2x3x16x128xbf16, #tpu.memory_space<vmem>>, %arg5: memref<1x128xf32, #tpu.memory_space<vmem>>, %arg6: memref<4x128x128xbf16, #tpu.memory_space<vmem>>, %arg7: memref<1x128xf32, #tpu.memory_space<vmem>>, %arg8: memref<128x128xbf16, #tpu.memory_space<vmem>>, %arg9: memref<1x128xf32, #tpu.memory_space<vmem>>, %arg10: memref<128x128xbf16, #tpu.memory_space<vmem>>, %arg11: memref<1x128xf32, #tpu.memory_space<vmem>>, %arg12: memref<1x8x8x128xf32, #tpu.memory_space<vmem>>) attributes {dimension_semantics = [#tpu.dimension_semantics<parallel>, #tpu.dimension_semantics<parallel>], iteration_bounds = array<i64: 2, 1>, scalar_prefetch = 0 : i64, scratch_operands = 0 : i64, tpu.core_type = #tpu.core_type<tc>, window_params = [{transform_indices = @transform_0, window_bounds = array<i64: 1, 16, 8, 16>}, {transform_indices = @transform_1, window_bounds = array<i64: 1, 2, 8, 16>}, {pipeline_mode = #tpu.pipeline_mode<synchronous>, transform_indices = @transform_2, window_bounds = array<i64: 2, 3, 16, 128>}, {pipeline_mode = #tpu.pipeline_mode<synchronous>, transform_indices = @transform_3, window_bounds = array<i64: 1, 128>}, {pipeline_mode = #tpu.pipeline_mode<synchronous>, transform_indices = @transform_4, window_bounds = array<i64: 4, 128, 128>}, {pipeline_mode = #tpu.pipeline_mode<synchronous>, transform_indices = @transform_5, window_bounds = array<i64: 1, 128>}, {pipeline_mode = #tpu.pipeline_mode<synchronous>, transform_indices = @transform_6, window_bounds = array<i64: 128, 128>}, {pipeline_mode = #tpu.pipeline_mode<synchronous>, transform_indices = @transform_7, window_bounds = array<i64: 1, 128>}, {pipeline_mode = #tpu.pipeline_mode<synchronous>, transform_indices = @transform_8, window_bounds = array<i64: 128, 128>}, {pipeline_mode = #tpu.pipeline_mode<synchronous>, transform_indices = @transform_9, window_bounds = array<i64: 1, 128>}, {transform_indices = @transform_10, window_bounds = array<i64: 1, 8, 8, 128>}]} {
    %c0 = arith.constant 0 : index
    %c0_0 = arith.constant 0 : index
    %c0_1 = arith.constant 0 : index
    %c0_2 = arith.constant 0 : index
    %0 = vector.load %arg2[%c0, %c0_0, %c0_1, %c0_2] : memref<1x16x8x16xbf16, #tpu.memory_space<vmem>>, vector<1x16x8x16xbf16>
    %1 = vector.shape_cast %0 : vector<1x16x8x16xbf16> to vector<16x8x16xbf16>
    %c0_3 = arith.constant 0 : index
    %c0_4 = arith.constant 0 : index
    %c0_5 = arith.constant 0 : index
    %c0_6 = arith.constant 0 : index
    %2 = vector.load %arg3[%c0_3, %c0_4, %c0_5, %c0_6] : memref<1x2x8x16xbf16, #tpu.memory_space<vmem>>, vector<1x2x8x16xbf16>
    %3 = vector.shape_cast %2 : vector<1x2x8x16xbf16> to vector<2x8x16xbf16>
    %4 = tpu.concatenate %1, %3 in 0 : vector<16x8x16xbf16>, vector<2x8x16xbf16> -> vector<18x8x16xbf16>
    %5 = vector.extract_strided_slice %4 {offsets = [0, 0, 0], sizes = [16, 8, 16], strides = [1, 1, 1]} : vector<18x8x16xbf16> to vector<16x8x16xbf16>
    %6 = vector.shape_cast %5 : vector<16x8x16xbf16> to vector<128x16xbf16>
    %7 = vector.extract_strided_slice %4 {offsets = [1, 0, 0], sizes = [16, 8, 16], strides = [1, 1, 1]} : vector<18x8x16xbf16> to vector<16x8x16xbf16>
    %8 = vector.shape_cast %7 : vector<16x8x16xbf16> to vector<128x16xbf16>
    %9 = vector.extract_strided_slice %4 {offsets = [2, 0, 0], sizes = [16, 8, 16], strides = [1, 1, 1]} : vector<18x8x16xbf16> to vector<16x8x16xbf16>
    %10 = vector.shape_cast %9 : vector<16x8x16xbf16> to vector<128x16xbf16>
    %cst = arith.constant 0.000000e+00 : f32
    %11 = vector.broadcast %cst : f32 to vector<128x128xf32>
    %c0_7 = arith.constant 0 : index
    %c0_8 = arith.constant 0 : index
    %c0_9 = arith.constant 0 : index
    %c0_10 = arith.constant 0 : index
    %12 = vector.load %arg4[%c0_7, %c0_8, %c0_9, %c0_10] : memref<2x3x16x128xbf16, #tpu.memory_space<vmem>>, vector<1x1x16x128xbf16>
    %13 = vector.shape_cast %12 : vector<1x1x16x128xbf16> to vector<16x128xbf16>
    %cst_11 = arith.constant dense<0.000000e+00> : vector<128x128xf32>
    %14 = tpu.matmul %6, %13, %cst_11 {dimension_numbers = #tpu.dot_dimension_numbers<[1], [0], [0], [1], [0, 0, 1, 1], [], []>} : vector<128x16xbf16>, vector<16x128xbf16>, vector<128x128xf32> -> vector<128x128xf32>
    %15 = arith.addf %11, %14 : vector<128x128xf32>
    %c0_12 = arith.constant 0 : index
    %c1 = arith.constant 1 : index
    %c0_13 = arith.constant 0 : index
    %c0_14 = arith.constant 0 : index
    %16 = vector.load %arg4[%c0_12, %c1, %c0_13, %c0_14] : memref<2x3x16x128xbf16, #tpu.memory_space<vmem>>, vector<1x1x16x128xbf16>
    %17 = vector.shape_cast %16 : vector<1x1x16x128xbf16> to vector<16x128xbf16>
    %cst_15 = arith.constant dense<0.000000e+00> : vector<128x128xf32>
    %18 = tpu.matmul %8, %17, %cst_15 {dimension_numbers = #tpu.dot_dimension_numbers<[1], [0], [0], [1], [0, 0, 1, 1], [], []>} : vector<128x16xbf16>, vector<16x128xbf16>, vector<128x128xf32> -> vector<128x128xf32>
    %19 = arith.addf %15, %18 : vector<128x128xf32>
    %c0_16 = arith.constant 0 : index
    %c2 = arith.constant 2 : index
    %c0_17 = arith.constant 0 : index
    %c0_18 = arith.constant 0 : index
    %20 = vector.load %arg4[%c0_16, %c2, %c0_17, %c0_18] : memref<2x3x16x128xbf16, #tpu.memory_space<vmem>>, vector<1x1x16x128xbf16>
    %21 = vector.shape_cast %20 : vector<1x1x16x128xbf16> to vector<16x128xbf16>
    %cst_19 = arith.constant dense<0.000000e+00> : vector<128x128xf32>
    %22 = tpu.matmul %10, %21, %cst_19 {dimension_numbers = #tpu.dot_dimension_numbers<[1], [0], [0], [1], [0, 0, 1, 1], [], []>} : vector<128x16xbf16>, vector<16x128xbf16>, vector<128x128xf32> -> vector<128x128xf32>
    %23 = arith.addf %19, %22 : vector<128x128xf32>
    %c0_20 = arith.constant 0 : index
    %c0_21 = arith.constant 0 : index
    %24 = vector.load %arg5[%c0_20, %c0_21] : memref<1x128xf32, #tpu.memory_space<vmem>>, vector<1x128xf32>
    %25 = vector.broadcast %24 : vector<1x128xf32> to vector<128x128xf32>
    %26 = arith.addf %23, %25 : vector<128x128xf32>
    %27 = arith.truncf %26 : vector<128x128xf32> to vector<128x128xbf16>
    %28 = vector.shape_cast %27 : vector<128x128xbf16> to vector<8x2x8x128xbf16>
    %cst_22 = arith.constant 0.000000e+00 : f32
    %29 = vector.broadcast %cst_22 : f32 to vector<128x128xf32>
    %c1_23 = arith.constant 1 : index
    %c0_24 = arith.constant 0 : index
    %c0_25 = arith.constant 0 : index
    %c0_26 = arith.constant 0 : index
    %30 = vector.load %arg4[%c1_23, %c0_24, %c0_25, %c0_26] : memref<2x3x16x128xbf16, #tpu.memory_space<vmem>>, vector<1x1x16x128xbf16>
    %31 = vector.shape_cast %30 : vector<1x1x16x128xbf16> to vector<16x128xbf16>
    %cst_27 = arith.constant dense<0.000000e+00> : vector<128x128xf32>
    %32 = tpu.matmul %6, %31, %cst_27 {dimension_numbers = #tpu.dot_dimension_numbers<[1], [0], [0], [1], [0, 0, 1, 1], [], []>} : vector<128x16xbf16>, vector<16x128xbf16>, vector<128x128xf32> -> vector<128x128xf32>
    %33 = arith.addf %29, %32 : vector<128x128xf32>
    %c1_28 = arith.constant 1 : index
    %c1_29 = arith.constant 1 : index
    %c0_30 = arith.constant 0 : index
    %c0_31 = arith.constant 0 : index
    %34 = vector.load %arg4[%c1_28, %c1_29, %c0_30, %c0_31] : memref<2x3x16x128xbf16, #tpu.memory_space<vmem>>, vector<1x1x16x128xbf16>
    %35 = vector.shape_cast %34 : vector<1x1x16x128xbf16> to vector<16x128xbf16>
    %cst_32 = arith.constant dense<0.000000e+00> : vector<128x128xf32>
    %36 = tpu.matmul %8, %35, %cst_32 {dimension_numbers = #tpu.dot_dimension_numbers<[1], [0], [0], [1], [0, 0, 1, 1], [], []>} : vector<128x16xbf16>, vector<16x128xbf16>, vector<128x128xf32> -> vector<128x128xf32>
    %37 = arith.addf %33, %36 : vector<128x128xf32>
    %c1_33 = arith.constant 1 : index
    %c2_34 = arith.constant 2 : index
    %c0_35 = arith.constant 0 : index
    %c0_36 = arith.constant 0 : index
    %38 = vector.load %arg4[%c1_33, %c2_34, %c0_35, %c0_36] : memref<2x3x16x128xbf16, #tpu.memory_space<vmem>>, vector<1x1x16x128xbf16>
    %39 = vector.shape_cast %38 : vector<1x1x16x128xbf16> to vector<16x128xbf16>
    %cst_37 = arith.constant dense<0.000000e+00> : vector<128x128xf32>
    %40 = tpu.matmul %10, %39, %cst_37 {dimension_numbers = #tpu.dot_dimension_numbers<[1], [0], [0], [1], [0, 0, 1, 1], [], []>} : vector<128x16xbf16>, vector<16x128xbf16>, vector<128x128xf32> -> vector<128x128xf32>
    %41 = arith.addf %37, %40 : vector<128x128xf32>
    %c0_38 = arith.constant 0 : index
    %c0_39 = arith.constant 0 : index
    %42 = vector.load %arg5[%c0_38, %c0_39] : memref<1x128xf32, #tpu.memory_space<vmem>>, vector<1x128xf32>
    %43 = vector.broadcast %42 : vector<1x128xf32> to vector<128x128xf32>
    %44 = arith.addf %41, %43 : vector<128x128xf32>
    %45 = arith.truncf %44 : vector<128x128xf32> to vector<128x128xbf16>
    %46 = vector.shape_cast %45 : vector<128x128xbf16> to vector<8x2x8x128xbf16>
    %cst_40 = arith.constant 0.000000e+00 : f32
    %47 = vector.broadcast %cst_40 : f32 to vector<64x128xf32>
    %48 = vector.extract_strided_slice %28 {offsets = [0, 0, 0, 0], sizes = [8, 1, 8, 128], strides = [1, 1, 1, 1]} : vector<8x2x8x128xbf16> to vector<8x1x8x128xbf16>
    %49 = vector.shape_cast %48 : vector<8x1x8x128xbf16> to vector<8x8x128xbf16>
    %50 = vector.shape_cast %49 : vector<8x8x128xbf16> to vector<64x128xbf16>
    %c0_41 = arith.constant 0 : index
    %c0_42 = arith.constant 0 : index
    %c0_43 = arith.constant 0 : index
    %51 = vector.load %arg6[%c0_41, %c0_42, %c0_43] : memref<4x128x128xbf16, #tpu.memory_space<vmem>>, vector<1x128x128xbf16>
    %52 = vector.shape_cast %51 : vector<1x128x128xbf16> to vector<128x128xbf16>
    %cst_44 = arith.constant dense<0.000000e+00> : vector<64x128xf32>
    %53 = tpu.matmul %50, %52, %cst_44 {dimension_numbers = #tpu.dot_dimension_numbers<[1], [0], [0], [1], [0, 0, 1, 1], [], []>} : vector<64x128xbf16>, vector<128x128xbf16>, vector<64x128xf32> -> vector<64x128xf32>
    %54 = arith.addf %47, %53 : vector<64x128xf32>
    %55 = vector.extract_strided_slice %46 {offsets = [0, 0, 0, 0], sizes = [8, 1, 8, 128], strides = [1, 1, 1, 1]} : vector<8x2x8x128xbf16> to vector<8x1x8x128xbf16>
    %56 = vector.shape_cast %55 : vector<8x1x8x128xbf16> to vector<8x8x128xbf16>
    %57 = vector.shape_cast %56 : vector<8x8x128xbf16> to vector<64x128xbf16>
    %c1_45 = arith.constant 1 : index
    %c0_46 = arith.constant 0 : index
    %c0_47 = arith.constant 0 : index
    %58 = vector.load %arg6[%c1_45, %c0_46, %c0_47] : memref<4x128x128xbf16, #tpu.memory_space<vmem>>, vector<1x128x128xbf16>
    %59 = vector.shape_cast %58 : vector<1x128x128xbf16> to vector<128x128xbf16>
    %cst_48 = arith.constant dense<0.000000e+00> : vector<64x128xf32>
    %60 = tpu.matmul %57, %59, %cst_48 {dimension_numbers = #tpu.dot_dimension_numbers<[1], [0], [0], [1], [0, 0, 1, 1], [], []>} : vector<64x128xbf16>, vector<128x128xbf16>, vector<64x128xf32> -> vector<64x128xf32>
    %61 = arith.addf %54, %60 : vector<64x128xf32>
    %62 = vector.extract_strided_slice %28 {offsets = [0, 1, 0, 0], sizes = [8, 1, 8, 128], strides = [1, 1, 1, 1]} : vector<8x2x8x128xbf16> to vector<8x1x8x128xbf16>
    %63 = vector.shape_cast %62 : vector<8x1x8x128xbf16> to vector<8x8x128xbf16>
    %64 = vector.shape_cast %63 : vector<8x8x128xbf16> to vector<64x128xbf16>
    %c2_49 = arith.constant 2 : index
    %c0_50 = arith.constant 0 : index
    %c0_51 = arith.constant 0 : index
    %65 = vector.load %arg6[%c2_49, %c0_50, %c0_51] : memref<4x128x128xbf16, #tpu.memory_space<vmem>>, vector<1x128x128xbf16>
    %66 = vector.shape_cast %65 : vector<1x128x128xbf16> to vector<128x128xbf16>
    %cst_52 = arith.constant dense<0.000000e+00> : vector<64x128xf32>
    %67 = tpu.matmul %64, %66, %cst_52 {dimension_numbers = #tpu.dot_dimension_numbers<[1], [0], [0], [1], [0, 0, 1, 1], [], []>} : vector<64x128xbf16>, vector<128x128xbf16>, vector<64x128xf32> -> vector<64x128xf32>
    %68 = arith.addf %61, %67 : vector<64x128xf32>
    %69 = vector.extract_strided_slice %46 {offsets = [0, 1, 0, 0], sizes = [8, 1, 8, 128], strides = [1, 1, 1, 1]} : vector<8x2x8x128xbf16> to vector<8x1x8x128xbf16>
    %70 = vector.shape_cast %69 : vector<8x1x8x128xbf16> to vector<8x8x128xbf16>
    %71 = vector.shape_cast %70 : vector<8x8x128xbf16> to vector<64x128xbf16>
    %c3 = arith.constant 3 : index
    %c0_53 = arith.constant 0 : index
    %c0_54 = arith.constant 0 : index
    %72 = vector.load %arg6[%c3, %c0_53, %c0_54] : memref<4x128x128xbf16, #tpu.memory_space<vmem>>, vector<1x128x128xbf16>
    %73 = vector.shape_cast %72 : vector<1x128x128xbf16> to vector<128x128xbf16>
    %cst_55 = arith.constant dense<0.000000e+00> : vector<64x128xf32>
    %74 = tpu.matmul %71, %73, %cst_55 {dimension_numbers = #tpu.dot_dimension_numbers<[1], [0], [0], [1], [0, 0, 1, 1], [], []>} : vector<64x128xbf16>, vector<128x128xbf16>, vector<64x128xf32> -> vector<64x128xf32>
    %75 = arith.addf %68, %74 : vector<64x128xf32>
    %c0_56 = arith.constant 0 : index
    %c0_57 = arith.constant 0 : index
    %76 = vector.load %arg7[%c0_56, %c0_57] : memref<1x128xf32, #tpu.memory_space<vmem>>, vector<1x128xf32>
    %77 = vector.broadcast %76 : vector<1x128xf32> to vector<64x128xf32>
    %78 = arith.addf %75, %77 : vector<64x128xf32>
    %cst_58 = arith.constant 0.000000e+00 : f32
    %79 = vector.broadcast %cst_58 : f32 to vector<64x128xf32>
    %80 = arith.maximumf %78, %79 : vector<64x128xf32>
    %81 = arith.truncf %80 : vector<64x128xf32> to vector<64x128xbf16>
    %c0_59 = arith.constant 0 : index
    %c0_60 = arith.constant 0 : index
    %82 = vector.load %arg8[%c0_59, %c0_60] : memref<128x128xbf16, #tpu.memory_space<vmem>>, vector<128x128xbf16>
    %cst_61 = arith.constant dense<0.000000e+00> : vector<64x128xf32>
    %83 = tpu.matmul %81, %82, %cst_61 {dimension_numbers = #tpu.dot_dimension_numbers<[1], [0], [0], [1], [0, 0, 1, 1], [], []>} : vector<64x128xbf16>, vector<128x128xbf16>, vector<64x128xf32> -> vector<64x128xf32>
    %c0_62 = arith.constant 0 : index
    %c0_63 = arith.constant 0 : index
    %84 = vector.load %arg9[%c0_62, %c0_63] : memref<1x128xf32, #tpu.memory_space<vmem>>, vector<1x128xf32>
    %85 = vector.broadcast %84 : vector<1x128xf32> to vector<64x128xf32>
    %86 = arith.addf %83, %85 : vector<64x128xf32>
    %cst_64 = arith.constant 0.000000e+00 : f32
    %87 = vector.broadcast %cst_64 : f32 to vector<64x128xf32>
    %88 = arith.maximumf %86, %87 : vector<64x128xf32>
    %89 = arith.truncf %88 : vector<64x128xf32> to vector<64x128xbf16>
    %c0_65 = arith.constant 0 : index
    %c0_66 = arith.constant 0 : index
    %90 = vector.load %arg10[%c0_65, %c0_66] : memref<128x128xbf16, #tpu.memory_space<vmem>>, vector<128x128xbf16>
    %cst_67 = arith.constant dense<0.000000e+00> : vector<64x128xf32>
    %91 = tpu.matmul %89, %90, %cst_67 {dimension_numbers = #tpu.dot_dimension_numbers<[1], [0], [0], [1], [0, 0, 1, 1], [], []>} : vector<64x128xbf16>, vector<128x128xbf16>, vector<64x128xf32> -> vector<64x128xf32>
    %c0_68 = arith.constant 0 : index
    %c0_69 = arith.constant 0 : index
    %92 = vector.load %arg11[%c0_68, %c0_69] : memref<1x128xf32, #tpu.memory_space<vmem>>, vector<1x128xf32>
    %93 = vector.broadcast %92 : vector<1x128xf32> to vector<64x128xf32>
    %94 = arith.addf %91, %93 : vector<64x128xf32>
    %95 = vector.shape_cast %94 : vector<64x128xf32> to vector<8x8x128xf32>
    %c0_70 = arith.constant 0 : index
    %c0_71 = arith.constant 0 : index
    %c0_72 = arith.constant 0 : index
    %c0_73 = arith.constant 0 : index
    %96 = vector.load %arg12[%c0_70, %c0_71, %c0_72, %c0_73] : memref<1x8x8x128xf32, #tpu.memory_space<vmem>>, vector<1x8x8x128xf32>
    %97 = vector.shape_cast %96 : vector<1x8x8x128xf32> to vector<8x8x128xf32>
    %98 = vector.shape_cast %95 : vector<8x8x128xf32> to vector<1x8x8x128xf32>
    tpu.vector_store %arg12[%c0_70, %c0_71, %c0_72, %c0_73], %98 {strides = array<i32>} : memref<1x8x8x128xf32, #tpu.memory_space<vmem>>, vector<1x8x8x128xf32>,
    return
  }
  func.func @transform_0(%arg0: i32, %arg1: i32) -> (i32, i32, i32, i32) {
    %c0_i32 = arith.constant 0 : i32
    %c0_i32_0 = arith.constant 0 : i32
    %c0_i32_1 = arith.constant 0 : i32
    return %arg0, %arg1, %c0_i32, %c0_i32_0 : i32, i32, i32, i32
  }
  func.func @transform_1(%arg0: i32, %arg1: i32) -> (i32, i32, i32, i32) {
    %c1_i32 = arith.constant 1 : i32
    %0 = arith.addi %arg1, %c1_i32 : i32
    %c8_i32 = arith.constant 8 : i32
    %1 = arith.muli %c8_i32, %0 : i32
    %c0_i32 = arith.constant 0 : i32
    %c0_i32_0 = arith.constant 0 : i32
    %c0_i32_1 = arith.constant 0 : i32
    return %arg0, %1, %c0_i32, %c0_i32_0 : i32, i32, i32, i32
  }
  func.func @transform_2(%arg0: i32, %arg1: i32) -> (i32, i32, i32, i32) {
    %c0_i32 = arith.constant 0 : i32
    %c0_i32_0 = arith.constant 0 : i32
    %c0_i32_1 = arith.constant 0 : i32
    %c0_i32_2 = arith.constant 0 : i32
    %c0_i32_3 = arith.constant 0 : i32
    return %c0_i32, %c0_i32_0, %c0_i32_1, %c0_i32_2 : i32, i32, i32, i32
  }
  func.func @transform_3(%arg0: i32, %arg1: i32) -> (i32, i32) {
    %c0_i32 = arith.constant 0 : i32
    %c0_i32_0 = arith.constant 0 : i32
    %c0_i32_1 = arith.constant 0 : i32
    return %c0_i32, %c0_i32_0 : i32, i32
  }
  func.func @transform_4(%arg0: i32, %arg1: i32) -> (i32, i32, i32) {
    %c0_i32 = arith.constant 0 : i32
    %c0_i32_0 = arith.constant 0 : i32
    %c0_i32_1 = arith.constant 0 : i32
    %c0_i32_2 = arith.constant 0 : i32
    return %c0_i32, %c0_i32_0, %c0_i32_1 : i32, i32, i32
  }
  func.func @transform_5(%arg0: i32, %arg1: i32) -> (i32, i32) {
    %c0_i32 = arith.constant 0 : i32
    %c0_i32_0 = arith.constant 0 : i32
    %c0_i32_1 = arith.constant 0 : i32
    return %c0_i32, %c0_i32_0 : i32, i32
  }
  func.func @transform_6(%arg0: i32, %arg1: i32) -> (i32, i32) {
    %c0_i32 = arith.constant 0 : i32
    %c0_i32_0 = arith.constant 0 : i32
    %c0_i32_1 = arith.constant 0 : i32
    return %c0_i32, %c0_i32_0 : i32, i32
  }
  func.func @transform_7(%arg0: i32, %arg1: i32) -> (i32, i32) {
    %c0_i32 = arith.constant 0 : i32
    %c0_i32_0 = arith.constant 0 : i32
    %c0_i32_1 = arith.constant 0 : i32
    return %c0_i32, %c0_i32_0 : i32, i32
  }
  func.func @transform_8(%arg0: i32, %arg1: i32) -> (i32, i32) {
    %c0_i32 = arith.constant 0 : i32
    %c0_i32_0 = arith.constant 0 : i32
    %c0_i32_1 = arith.constant 0 : i32
    return %c0_i32, %c0_i32_0 : i32, i32
  }
  func.func @transform_9(%arg0: i32, %arg1: i32) -> (i32, i32) {
    %c0_i32 = arith.constant 0 : i32
    %c0_i32_0 = arith.constant 0 : i32
    %c0_i32_1 = arith.constant 0 : i32
    return %c0_i32, %c0_i32_0 : i32, i32
  }
  func.func @transform_10(%arg0: i32, %arg1: i32) -> (i32, i32, i32, i32) {
    %c0_i32 = arith.constant 0 : i32
    %c0_i32_0 = arith.constant 0 : i32
    %c0_i32_1 = arith.constant 0 : i32
    return %arg0, %arg1, %c0_i32, %c0_i32_0 : i32, i32, i32, i32
  }
}

</mosaic_0001>

<bundles_post_ra>
// kernel: h_analysis_transform.1
= control target key start
LH: loop header
LB: loop body
LE: loop exit
PB: predicated region body
PF: predicated region fallthrough
CT: control target
= control target key end

     0   :  { %s3223_s13 = smov 0   ;;  %s3225_s14 = smov 0   ;;  %s3669_s0 = inlined_call_operand.vmem [shape: bf16[2,18,8,16], index: 0, kind: input, shape index: {}, may-alias: {0,1}]   ;;  %s3670_s1 = inlined_call_operand.vmem [shape: bf16[2,18,8,16], index: 1, kind: input, shape index: {}, may-alias: {0,1}]   ;;  %s3671_s2 = inlined_call_operand.vmem [shape: bf16[2,3,16,128], index: 2, kind: input, shape index: {}]   ;;  %s3672_s3 = inlined_call_operand.vmem [shape: f32[1,128], index: 3, kind: input, shape index: {}]   ;;  %s3673_s4 = inlined_call_operand.vmem [shape: bf16[4,128,128], index: 4, kind: input, shape index: {}]   ;;  %s3674_s5 = inlined_call_operand.vmem [shape: f32[1,128], index: 5, kind: input, shape index: {}]   ;;  %s3675_s6 = inlined_call_operand.vmem [shape: bf16[128,128], index: 6, kind: input, shape index: {}]   ;;  %s3676_s7 = inlined_call_operand.vmem [shape: f32[1,128], index: 7, kind: input, shape index: {}]   ;;  %s3677_s8 = inlined_call_operand.vmem [shape: bf16[128,128], index: 8, kind: input, shape index: {}]   ;;  %s3678_s9 = inlined_call_operand.vmem [shape: f32[1,128], index: 9, kind: input, shape index: {}]   ;;  %s3679_s10 = inlined_call_operand.vmem [shape: f32[2,8,8,128], index: 10, kind: output, shape index: {}]  }
   0x1   :  { %s3227_s15 = smov 0  }
   0x2 LB: > { %s32_s16 = sadd.s32 1, %s3162_s14  ;;  %p2358_p0 = scmp.ge.s32.totalorder %s3166_s15, 1  ;;  %s3166_s15 = sphi %s3227_s15, %s20_s15   ;;  %s3162_s14 = sphi %s3225_s14, %s3681_s14   ;;  %s3158_s13 = sphi %s3223_s13, %s3680_s13  }
   0x3   : > { %p34_p1 = scmp.ge.s32.totalorder %s32_s16, 2  ;;  %p366_p2 = scmp.lt.s32.totalorder %s3166_s15, 3 }
   0x5   : > { %s3683_s16 = smov (%p34_p1, %s32_s16), 0  ;;  %p367_p3 = pnand %p2358_p0, %p366_p2 }
   0x6   : > { %v3074_v0 = vld [vmem:[%s3671_s2 + $0x8] sm:$0xff] (!%p367_p3)   ;;  %p432_p4 = scmp.lt.s32.totalorder (!%p367_p3), %s3158_s13, 1  ;;  %v3075_v1 = vld [vmem:[%s3671_s2] sm:$0xff] (!%p367_p3)   ;;  %v3092_v3 = vld [vmem:[%s3671_s2 + $0x10] sm:$0xff] (!%p367_p3)   ;;  %vm539_vm0 = vcmask (!%p367_p3), 130048  }
   0x7   : > { %370 = sbr.rel (%p367_p3) target bundleno = 1109 (0x455), region = 60  ;;  %2707 = vmatprep.subr.bf16.mxu1 (!%p367_p3), %v3074_v0  ;;  %v3080_v2 = vld [vmem:[%s3671_s2 + $0x20] sm:$0xff] (!%p367_p3)   ;;  %2725 = vmatprep.subr.bf16.mxu0 (!%p367_p3), %v3075_v1  ;;  %v3093_v17 = vld [vmem:[%s3671_s2 + $0x18] sm:$0xff] (!%p367_p3)   ;;  %v3095_v38 = vld [vmem:[%s3671_s2 + $0x28] sm:$0xff] (!%p367_p3)  }
   0x8   : > { %2708 = vmatpush3.bf16.msra.mxu1 (!%p367_p3), %v3074_v0  ;;  %2726 = vmatpush3.bf16.msra.mxu0 (!%p367_p3), %v3075_v1  ;;  %v3096_v41 = vld [vmem:[%s3673_s4 + $0x40] sm:$0xff] (!%p367_p3)   ;;  %v3097_v42 = vld [vmem:[%s3673_s4 + $0x48] sm:$0xff] (!%p367_p3)   ;;  %v3098_v43 = vld [vmem:[%s3673_s4 + $0x50] sm:$0xff] (!%p367_p3)  }
   0x9   : > { %2761 = vmatprep.subr.bf16.mxu1 (!%p367_p3), %v3080_v2  ;;  %2743 = vmatprep.subr.bf16.mxu0 (!%p367_p3), %v3092_v3  ;;  %v3099_v44 = vld [vmem:[%s3673_s4 + $0x58] sm:$0xff] (!%p367_p3)   ;;  %v3100_v45 = vld [vmem:[%s3673_s4 + $0x60] sm:$0xff] (!%p367_p3)   ;;  %v3101_v46 = vld [vmem:[%s3673_s4 + $0x68] sm:$0xff] (!%p367_p3)  }
   0xa   : > { %v3102_v47 = vld [vmem:[%s3673_s4 + $0x70] sm:$0xff] (!%p367_p3)   ;;  %v3103_v48 = vld [vmem:[%s3673_s4 + $0x78] sm:$0xff] (!%p367_p3)   ;;  %v3381_v49 = vld [vmem:[%s3673_s4] sm:$0xff] (!%p367_p3)  }
   0xe   : > { %s3685_s13 = smov (!%p432_p4, %s3158_s13), 1 }
   0xf   : > { %s3047_s25 = smul.u32 72, %s3685_s13  ;;  %s2564_s27 = sshll.u32 %s3685_s13, 6 }
  0x10   : > { %s467_s12 = scalar_lea.vmem %s3679_s10, %s2564_s27 }
  0x11   : > { %s3259_s28 = scalar_lea.vmem %s3669_s0, %s3047_s25  ;;  %s2563_s11 = sadd.s32 64, %s3047_s25 }
  0x12   : > { %v471_v4 = vld [vmem:[%s3259_s28 + $0x4] sm:$0xf]  ;;  %v472_v5 = vld [vmem:[%s3259_s28 + $0x8] sm:$0xf]  ;;  %v473_v6 = vld [vmem:[%s3259_s28 + $0xc] sm:$0xf]  ;;  %s3301_s18 = scalar_lea.vmem %s3670_s1, %s2563_s11 }
  0x13   : > { %v474_v7 = vld [vmem:[%s3259_s28 + $0x10] sm:$0xf]  ;;  %v2365_v8 = vcombine.low %v471_v4, %v472_v5  ;;  %v3265_v9 = vcombine.low %v472_v5, %v473_v6  ;;  %v470_v10 = vld [vmem:[%s3259_s28] sm:$0xf]  ;;  %v475_v11 = vld [vmem:[%s3259_s28 + $0x14] sm:$0xf] }
  0x14   : > { %v2366_v12 = vcombine.low %v473_v6, %v474_v7  ;;  %v3269_v13 = vcombine.low %v470_v10, %v471_v4  ;;  %v476_v14 = vld [vmem:[%s3259_s28 + $0x18] sm:$0xf]  ;;  %v3272_v15 = vcombine.low %v474_v7, %v475_v11  ;;  %v477_v18 = vld [vmem:[%s3259_s28 + $0x1c] sm:$0xf]  ;;  %v478_v19 = vld [vmem:[%s3259_s28 + $0x20] sm:$0xf] }
  0x15   : > { %2709 = vmatprep.mubr.msk.bf16.mxu1 %vm539_vm0, %v2365_v8  ;;  %v2367_v16 = vcombine.low %v475_v11, %v476_v14  ;;  %v479_v20 = vld [vmem:[%s3259_s28 + $0x24] sm:$0xf]  ;;  %v480_v21 = vld [vmem:[%s3259_s28 + $0x28] sm:$0xf]  ;;  %v2368_v22 = vcombine.low %v477_v18, %v478_v19  ;;  %v2385_v23 = vcombine.low %v476_v14, %v477_v18  ;;  %v481_v26 = vld [vmem:[%s3259_s28 + $0x2c] sm:$0xf] }
  0x16   : > { %2727 = vmatprep.mubr.msk.bf16.mxu0 %vm539_vm0, %v3269_v13  ;;  %2710 = vmatmul.mubr.msk.bf16.vlgmr.msra.gmra.mrb[0].mxu1 %vm539_vm0, %v2366_v12  ;;  %v2369_v24 = vcombine.low %v479_v20, %v480_v21  ;;  %v2386_v25 = vcombine.low %v478_v19, %v479_v20  ;;  %v482_v27 = vld [vmem:[%s3259_s28 + $0x30] sm:$0xf]  ;;  %v483_v28 = vld [vmem:[%s3259_s28 + $0x34] sm:$0xf]  ;;  %v484_v29 = vld [vmem:[%s3259_s28 + $0x38] sm:$0xf]  ;;  %v2387_v31 = vcombine.low %v480_v21, %v481_v26 }
  0x17   : > { %2728 = vmatmul.mubr.msk.bf16.vlgmr.msra.gmra.mrb[0].mxu0 %vm539_vm0, %v3265_v9  ;;  %2762 = vmatpush3.bf16.msra.mxu1 %v3080_v2  ;;  %v2370_v30 = vcombine.low %v481_v26, %v482_v27  ;;  %v2371_v32 = vcombine.low %v483_v28, %v484_v29  ;;  %v2388_v33 = vcombine.low %v482_v27, %v483_v28  ;;  %v485_v34 = vld [vmem:[%s3259_s28 + $0x3c] sm:$0xf]  ;;  %v486_v35 = vld [vmem:[%s3301_s18] sm:$0xf]  ;;  %v487_v39 = vld [vmem:[%s3301_s18 + $0x4] sm:$0xf] }
  0x18   : > { %2713 = vmatprep.mubr.msk.bf16.mxu1 %vm539_vm0, %v2367_v16  ;;  %2731 = vmatprep.mubr.msk.bf16.mxu0 %vm539_vm0, %v3272_v15  ;;  %v2372_v36 = vcombine.low %v485_v34, %v486_v35  ;;  %v2389_v37 = vcombine.low %v484_v29, %v485_v34  ;;  %v2401_v40 = vcombine.low %v486_v35, %v487_v39 }
  0x19   : > { %2744 = vmatpush3.bf16.msra.mxu0 %v3092_v3  ;;  %2779 = vmatprep.subr.bf16.mxu1 %v3093_v17  ;;  %v3387_v3 = vld [vmem:[%s3672_s3] ss:$0 sm:$0xff] }
  0x1a   : > { %2815 = vmatprep.subr.bf16.mxu0 %v3096_v41 }
  0x1e   : > { %2714 = vmatmul.mubr.msk.bf16.gmra.mrb[4].mxu1 %vm539_vm0, %v2368_v22 }
  0x1f   : > { %2732 = vmatmul.mubr.msk.bf16.gmra.mrb[4].mxu0 %vm539_vm0, %v2385_v23  ;;  %2717 = vmatprep.mubr.msk.bf16.mxu1 %vm539_vm0, %v2369_v24 }
  0x20   : > { %2735 = vmatprep.mubr.msk.bf16.mxu0 %vm539_vm0, %v2386_v25 }
  0x26   : > { %2718 = vmatmul.mubr.msk.bf16.gmra.mrb[8].mxu1 %vm539_vm0, %v2370_v30 }
  0x27   : > { %2736 = vmatmul.mubr.msk.bf16.gmra.mrb[8].mxu0 %vm539_vm0, %v2387_v31  ;;  %2721 = vmatprep.mubr.msk.bf16.mxu1 %vm539_vm0, %v2371_v32 }
  0x28   : > { %2739 = vmatprep.mubr.msk.bf16.mxu0 %vm539_vm0, %v2388_v33 }
  0x2e   : > { %2722 = vmatmul.mubr.msk.bf16.gmra.mrb[12].mxu1 %vm539_vm0, %v2372_v36 }
  0x2f   : > { %2740 = vmatmul.mubr.msk.bf16.gmra.mrb[12].mxu0 %vm539_vm0, %v2389_v37  ;;  %2763 = vmatprep.mubr.msk.bf16.mxu1 %vm539_vm0, %v2365_v8 }
  0x30   : > { %2745 = vmatprep.mubr.msk.bf16.mxu0 %vm539_vm0, %v3265_v9 }
  0x36   : > { %2764 = vmatmul.mubr.msk.bf16.vlgmr.msra.gmra.mrb[16].mxu1 %vm539_vm0, %v2366_v12 }
  0x37   : > { %2746 = vmatmul.mubr.msk.bf16.vlgmr.msra.gmra.mrb[0].mxu0 %vm539_vm0, %v3272_v15  ;;  %2780 = vmatpush3.bf16.msra.mxu1 %v3093_v17 }
  0x38   : > { %2749 = vmatprep.mubr.msk.bf16.mxu0 %vm539_vm0, %v2385_v23  ;;  %2767 = vmatprep.mubr.msk.bf16.mxu1 %vm539_vm0, %v2367_v16 }
  0x39   : > { %2797 = vmatprep.subr.bf16.mxu1 %v3095_v38  ;;  %2816 = vmatpush3.bf16.msra.mxu0 %v3096_v41 }
  0x3a   : > { %2817 = vmatprep.subr.bf16.mxu0 %v3097_v42 }
  0x3d   : > { %2818 = vmatpush3.bf16.msra.mxu0 %v3097_v42 }
  0x3e   : > { %2768 = vmatmul.mubr.msk.bf16.gmra.mrb[20].mxu1 %vm539_vm0, %v2368_v22  ;;  %2819 = vmatprep.subr.bf16.mxu0 %v3098_v43 }
  0x3f   : > { %2750 = vmatmul.mubr.msk.bf16.gmra.mrb[4].mxu0 %vm539_vm0, %v2386_v25  ;;  %2771 = vmatprep.mubr.msk.bf16.mxu1 %vm539_vm0, %v2369_v24 }
  0x40   : > { %2753 = vmatprep.mubr.msk.bf16.mxu0 %vm539_vm0, %v2387_v31 }
  0x41   : > { %2820 = vmatpush3.bf16.msra.mxu0 %v3098_v43 }
  0x42   : > { %2821 = vmatprep.subr.bf16.mxu0 %v3099_v44 }
  0x45   : > { %2822 = vmatpush3.bf16.msra.mxu0 %v3099_v44 }
  0x46   : > { %2772 = vmatmul.mubr.msk.bf16.gmra.mrb[24].mxu1 %vm539_vm0, %v2370_v30  ;;  %2823 = vmatprep.subr.bf16.mxu0 %v3100_v45 }
  0x47   : > { %2754 = vmatmul.mubr.msk.bf16.gmra.mrb[8].mxu0 %vm539_vm0, %v2388_v33  ;;  %2775 = vmatprep.mubr.msk.bf16.mxu1 %vm539_vm0, %v2371_v32 }
  0x48   : > { %2757 = vmatprep.mubr.msk.bf16.mxu0 %vm539_vm0, %v2389_v37 }
  0x49   : > { %2824 = vmatpush3.bf16.msra.mxu0 %v3100_v45 }
  0x4a   : > { %2825 = vmatprep.subr.bf16.mxu0 %v3101_v46 }
  0x4d   : > { %2826 = vmatpush3.bf16.msra.mxu0 %v3101_v46 }
  0x4e   : > { %2776 = vmatmul.mubr.msk.bf16.gmra.mrb[28].mxu1 %vm539_vm0, %v2372_v36  ;;  %2827 = vmatprep.subr.bf16.mxu0 %v3102_v47 }
  0x4f   : > { %2758 = vmatmul.mubr.msk.bf16.gmra.mrb[12].mxu0 %vm539_vm0, %v2401_v40  ;;  %2781 = vmatprep.mubr.msk.bf16.mxu1 %vm539_vm0, %v3269_v13 }
  0x51   : > { %2828 = vmatpush3.bf16.msra.mxu0 %v3102_v47 }
  0x52   : > { %2829 = vmatprep.subr.bf16.mxu0 %v3103_v48 }
  0x55   : > { %2830 = vmatpush3.bf16.msra.mxu0 %v3103_v48 }
  0x56   : > { %2782 = vmatmul.mubr.msk.bf16.vlgmr.msra.gmra.mrb[16].mxu1 %vm539_vm0, %v3265_v9  ;;  %2839 = vmatprep.subr.bf16.mxu0 %v3381_v49 }
  0x57   : > { %2798 = vmatpush3.bf16.msra.mxu1 %v3095_v38  ;;  %2785 = vmatprep.mubr.msk.bf16.mxu1 %vm539_vm0, %v3272_v15 }
  0x5e   : > { %2786 = vmatmul.mubr.msk.bf16.gmra.mrb[20].mxu1 %vm539_vm0, %v2385_v23 }
  0x5f   : > { %2789 = vmatprep.mubr.msk.bf16.mxu1 %vm539_vm0, %v2386_v25 }
  0x66   : > { %2790 = vmatmul.mubr.msk.bf16.gmra.mrb[24].mxu1 %vm539_vm0, %v2387_v31 }
  0x67   : > { %2793 = vmatprep.mubr.msk.bf16.mxu1 %vm539_vm0, %v2388_v33 }
  0x6e   : > { %2794 = vmatmul.mubr.msk.bf16.gmra.mrb[28].mxu1 %vm539_vm0, %v2389_v37 }
  0x6f   : > { %2799 = vmatprep.mubr.msk.bf16.mxu1 %vm539_vm0, %v3265_v9 }
  0x76   : > { %2800 = vmatmul.mubr.msk.bf16.vlgmr.msra.gmra.mrb[16].mxu1 %vm539_vm0, %v3272_v15 }
  0x77   : > { %2803 = vmatprep.mubr.msk.bf16.mxu1 %vm539_vm0, %v2385_v23 }
  0x7e   : > { %2804 = vmatmul.mubr.msk.bf16.gmra.mrb[20].mxu1 %vm539_vm0, %v2386_v25 }
  0x7f   : > { %2807 = vmatprep.mubr.msk.bf16.mxu1 %vm539_vm0, %v2387_v31 }
  0x86   : > { %2808 = vmatmul.mubr.msk.bf16.gmra.mrb[24].mxu1 %vm539_vm0, %v2388_v33 }
  0x87   : > { %2811 = vmatprep.mubr.msk.bf16.mxu1 %vm539_vm0, %v2389_v37 }
  0x8e   : > { %2812 = vmatmul.mubr.msk.bf16.gmra.mrb[28].mxu1 %vm539_vm0, %v2401_v40 }
  0xe9   : > { %v2711_v50 = vpop.f32.mrb[0].mxu1 }
  0xea   : > { %v598_v51 = vpop.f32.mrb[1].mxu1 }
  0xeb   : > { %v2712_v52 = vpop.f32.mrb[2].mxu1 }
  0xec   : > { %v601_v53 = vpop.f32.mrb[3].mxu1 }
  0xf1   : > { %v2715_v54 = vpop.f32.mrb[4].mxu1 }
  0xf2   : > { %v614_v55 = vpop.f32.mrb[5].mxu1 }
  0xf3   : > { %v2716_v56 = vpop.f32.mrb[6].mxu1 }
  0xf4   : > { %v617_v57 = vpop.f32.mrb[7].mxu1 }
  0xf9   : > { %v2719_v58 = vpop.f32.mrb[8].mxu1 }
  0xfa   : > { %v630_v59 = vpop.f32.mrb[9].mxu1 }
  0xfb   : > { %v2720_v60 = vpop.f32.mrb[10].mxu1 }
  0xfc   : > { %v633_v61 = vpop.f32.mrb[11].mxu1 }
 0x101   : > { %v2723_v62 = vpop.f32.mrb[12].mxu1 }
 0x102   : > { %v646_v63 = vpop.f32.mrb[13].mxu1 }
 0x103   : > { %v2724_v0 = vpop.f32.mrb[14].mxu1 }
 0x104   : > { %v649_v1 = vpop.f32.mrb[15].mxu1 }
 0x10a   : > { %v2747_v2 = vpop.f32.mrb[0].mxu0 }
 0x10b   : > { %v2959_v4 = vadd.f32 %v2747_v2, %v2711_v50  ;;  %v847_v5 = vpop.f32.mrb[1].mxu0 }
 0x10c   : > { %v2960_v6 = vadd.f32 %v847_v5, %v598_v51  ;;  %v2748_v7 = vpop.f32.mrb[2].mxu0 }
 0x10d   : > { %v3390_v8 = vadd.f32 %v2959_v4, %v3387_v3  ;;  %v2961_v9 = vadd.f32 %v2748_v7, %v2712_v52  ;;  %v850_v10 = vpop.f32.mrb[3].mxu0 }
 0x10e   : > { %v3393_v11 = vadd.f32 %v2960_v6, %v3387_v3  ;;  %v2962_v12 = vadd.f32 %v850_v10, %v601_v53  ;;  %v3132_v6 = vld [vmem:[%s3675_s6 + $0x20] sm:$0xff]  }
 0x10f   : > { %v3396_v13 = vadd.f32 %v2961_v9, %v3387_v3 }
 0x110   : > { %v3399_v14 = vadd.f32 %v2962_v12, %v3387_v3  ;;  %v2569_v15 = vpack.c.bf16 %v3390_v8, %v3393_v11  ;;  %v3113_v8 = vld [vmem:[%s3673_s4 + $0x88] sm:$0xff]   ;;  %v3114_v11 = vld [vmem:[%s3673_s4 + $0x90] sm:$0xff]  }
 0x112   : > { %v2751_v16 = vpop.f32.mrb[4].mxu0  ;;  %v2573_v17 = vpack.c.bf16 %v3396_v13, %v3399_v14  ;;  %v3119_v13 = vld [vmem:[%s3673_s4 + $0xb8] sm:$0xff]   ;;  %v3120_v14 = vld [vmem:[%s3673_s4 + $0xc0] sm:$0xff]  }
 0x113   : > { %v2963_v18 = vadd.f32 %v2751_v16, %v2715_v54  ;;  %v863_v19 = vpop.f32.mrb[5].mxu0 }
 0x114   : > { %v2964_v20 = vadd.f32 %v863_v19, %v614_v55  ;;  %v2752_v21 = vpop.f32.mrb[6].mxu0 }
 0x115   : > { %v3406_v22 = vadd.f32 %v2963_v18, %v3387_v3  ;;  %v2965_v23 = vadd.f32 %v2752_v21, %v2716_v56  ;;  %v866_v24 = vpop.f32.mrb[7].mxu0  ;;  %v3133_v18 = vld [vmem:[%s3675_s6 + $0x28] sm:$0xff]  }
 0x116   : > { %v3409_v25 = vadd.f32 %v2964_v20, %v3387_v3  ;;  %v2966_v26 = vadd.f32 %v866_v24, %v617_v57 }
 0x117   : > { %v3412_v27 = vadd.f32 %v2965_v23, %v3387_v3 }
 0x118   : > { %v2570_v28 = vpack.c.bf16 %v3406_v22, %v3409_v25  ;;  %v3417_v29 = vadd.f32 %v2966_v26, %v3387_v3  ;;  %v3116_v22 = vld [vmem:[%s3673_s4 + $0xa0] sm:$0xff]   ;;  %v3117_v25 = vld [vmem:[%s3673_s4 + $0xa8] sm:$0xff]  }
 0x11a   : > { %v2574_v30 = vpack.c.bf16 %v3412_v27, %v3417_v29  ;;  %v2755_v31 = vpop.f32.mrb[8].mxu0  ;;  %v3124_v27 = vld [vmem:[%s3673_s4 + $0xe0] sm:$0xff]   ;;  %v3125_v29 = vld [vmem:[%s3673_s4 + $0xe8] sm:$0xff]  }
 0x11b   : > { %v2967_v32 = vadd.f32 %v2755_v31, %v2719_v58  ;;  %v879_v33 = vpop.f32.mrb[9].mxu0 }
 0x11c   : > { %v2968_v34 = vadd.f32 %v879_v33, %v630_v59  ;;  %v2756_v35 = vpop.f32.mrb[10].mxu0 }
 0x11d   : > { %v3422_v36 = vadd.f32 %v2967_v32, %v3387_v3  ;;  %v2969_v37 = vadd.f32 %v2756_v35, %v2720_v60  ;;  %v882_v38 = vpop.f32.mrb[11].mxu0  ;;  %v3128_v60 = vld [vmem:[%s3675_s6] sm:$0xff]  }
 0x11e   : > { %v3425_v39 = vadd.f32 %v2968_v34, %v3387_v3  ;;  %v2970_v40 = vadd.f32 %v882_v38, %v633_v61  ;;  %v3129_v61 = vld [vmem:[%s3675_s6 + $0x8] sm:$0xff]   ;;  %2911 = vmatprep.subr.bf16.mxu1 %v3128_v60  ;;  %v3106_v38 = vld [vmem:[%s3673_s4 + $0x10] sm:$0xff]  }
 0x11f   : > { %v3428_v41 = vadd.f32 %v2969_v37, %v3387_v3  ;;  %2912 = vmatpush3.bf16.msra.mxu1 %v3128_v60  ;;  %v3105_v34 = vld [vmem:[%s3673_s4 + $0x8] sm:$0xff]  }
 0x120   : > { %v3431_v42 = vadd.f32 %v2970_v40, %v3387_v3  ;;  %v2571_v43 = vpack.c.bf16 %v3422_v36, %v3425_v39  ;;  %2913 = vmatprep.subr.bf16.mxu1 %v3129_v61  ;;  %v3122_v36 = vld [vmem:[%s3673_s4 + $0xd0] sm:$0xff]   ;;  %v3123_v39 = vld [vmem:[%s3673_s4 + $0xd8] sm:$0xff]  }
 0x122   : > { %v2759_v44 = vpop.f32.mrb[12].mxu0  ;;  %v2575_v45 = vpack.c.bf16 %v3428_v41, %v3431_v42  ;;  %v3127_v41 = vld [vmem:[%s3673_s4 + $0xf8] sm:$0xff]   ;;  %v3134_v42 = vld [vmem:[%s3675_s6 + $0x30] sm:$0xff]  }
 0x123   : > { %v2971_v46 = vadd.f32 %v2759_v44, %v2723_v62  ;;  %v895_v47 = vpop.f32.mrb[13].mxu0  ;;  %v3130_v62 = vld [vmem:[%s3675_s6 + $0x10] sm:$0xff]   ;;  %2914 = vmatpush3.bf16.msra.mxu1 %v3129_v61  ;;  %v3108_v61 = vld [vmem:[%s3673_s4 + $0x20] sm:$0xff]  }
 0x124   : > { %v2972_v48 = vadd.f32 %v895_v47, %v646_v63  ;;  %v2760_v50 = vpop.f32.mrb[14].mxu0  ;;  %2915 = vmatprep.subr.bf16.mxu1 %v3130_v62  ;;  %v3131_v63 = vld [vmem:[%s3675_s6 + $0x18] sm:$0xff]  }
 0x125   : > { %v3438_v51 = vadd.f32 %v2971_v46, %v3387_v3  ;;  %v2973_v52 = vadd.f32 %v2760_v50, %v2724_v0  ;;  %v898_v53 = vpop.f32.mrb[15].mxu0 }
 0x126   : > { %v3441_v54 = vadd.f32 %v2972_v48, %v3387_v3  ;;  %v2974_v55 = vadd.f32 %v898_v53, %v649_v1  ;;  %v3107_v53 = vld [vmem:[%s3673_s4 + $0x18] sm:$0xff]  }
 0x127   : > { %v3444_v56 = vadd.f32 %v2973_v52, %v3387_v3  ;;  %2916 = vmatpush3.bf16.msra.mxu1 %v3130_v62 }
 0x128   : > { %v3447_v57 = vadd.f32 %v2974_v55, %v3387_v3  ;;  %v2572_v58 = vpack.c.bf16 %v3438_v51, %v3441_v54  ;;  %2917 = vmatprep.subr.bf16.mxu1 %v3131_v63  ;;  %v2541_v51 = vld [vmem:[%s3674_s5] ss:$0 sm:$0xff] }
 0x12a   : > { %v2576_v59 = vpack.c.bf16 %v3444_v56, %v3447_v57 }
 0x12b   : > { %2918 = vmatpush3.bf16.msra.mxu1 %v3131_v63 }
 0x12c   : > { %2919 = vmatprep.subr.bf16.mxu1 %v3132_v6 }
 0x12f   : > { %2920 = vmatpush3.bf16.msra.mxu1 %v3132_v6 }
 0x130   : > { %2921 = vmatprep.subr.bf16.mxu1 %v3133_v18 }
 0x133   : > { %2922 = vmatpush3.bf16.msra.mxu1 %v3133_v18  ;;  %v3111_v18 = vld [vmem:[%s3673_s4 + $0x38] sm:$0xff]  }
 0x134   : > { %2923 = vmatprep.subr.bf16.mxu1 %v3134_v42 }
 0x137   : > { %2924 = vmatpush3.bf16.msra.mxu1 %v3134_v42 }
 0x149   : > { %v2801_v0 = vpop.f32.mrb[16].mxu1 }
 0x14a   : > { %v1317_v1 = vadd.f32 %v2801_v0, %v3387_v3  ;;  %v1236_v2 = vpop.f32.mrb[17].mxu1 }
 0x14b   : > { %v1315_v4 = vadd.f32 %v3387_v3, %v1236_v2  ;;  %v2802_v5 = vpop.f32.mrb[18].mxu1 }
 0x14c   : > { %v3471_v7 = vadd.f32 %v2802_v5, %v3387_v3  ;;  %v1239_v9 = vpop.f32.mrb[19].mxu1 }
 0x14d   : > { %v2565_v10 = vpack.c.bf16 %v1317_v1, %v1315_v4  ;;  %v3474_v12 = vadd.f32 %v3387_v3, %v1239_v9  ;;  %v3109_v9 = vld [vmem:[%s3673_s4 + $0x28] sm:$0xff]  }
 0x14f   : > { %v2577_v16 = vpack.c.bf16 %v3471_v7, %v3474_v12  ;;  %2831 = vmatprep.mubr.bf16.mxu0 %v2565_v10 }
 0x151   : > { %v2805_v19 = vpop.f32.mrb[20].mxu1 }
 0x152   : > { %v1321_v20 = vadd.f32 %v2805_v19, %v3387_v3  ;;  %v1252_v21 = vpop.f32.mrb[21].mxu1  ;;  %v3112_v19 = vld [vmem:[%s3673_s4 + $0x80] sm:$0xff]  }
 0x153   : > { %v1319_v23 = vadd.f32 %v3387_v3, %v1252_v21  ;;  %v2806_v24 = vpop.f32.mrb[22].mxu1 }
 0x154   : > { %v3484_v26 = vadd.f32 %v2806_v24, %v3387_v3  ;;  %v1255_v31 = vpop.f32.mrb[23].mxu1 }
 0x155   : > { %v2566_v32 = vpack.c.bf16 %v1321_v20, %v1319_v23  ;;  %v3487_v33 = vadd.f32 %v3387_v3, %v1255_v31 }
 0x157   : > { %v2578_v35 = vpack.c.bf16 %v3484_v26, %v3487_v33  ;;  %2832 = vmatmul.mubr.bf16.vlgmr.msra.gmra.mrb[16].mxu0 %v2566_v32 }
 0x158   : > { %2840 = vmatpush3.bf16.msra.mxu0 %v3381_v49 }
 0x159   : > { %v2809_v37 = vpop.f32.mrb[24].mxu1  ;;  %2841 = vmatprep.subr.bf16.mxu0 %v3105_v34 }
 0x15a   : > { %v1325_v40 = vadd.f32 %v2809_v37, %v3387_v3  ;;  %v1268_v44 = vpop.f32.mrb[25].mxu1 }
 0x15b   : > { %v1323_v46 = vadd.f32 %v3387_v3, %v1268_v44  ;;  %v2810_v47 = vpop.f32.mrb[26].mxu1 }
 0x15c   : > { %v3501_v48 = vadd.f32 %v2810_v47, %v3387_v3  ;;  %2842 = vmatpush3.bf16.msra.mxu0 %v3105_v34  ;;  %v1271_v50 = vpop.f32.mrb[27].mxu1 }
 0x15d   : > { %v2567_v52 = vpack.c.bf16 %v1325_v40, %v1323_v46  ;;  %v3504_v49 = vadd.f32 %v3387_v3, %v1271_v50  ;;  %2843 = vmatprep.subr.bf16.mxu0 %v3106_v38  ;;  %v3138_v50 = vld [vmem:[%s3677_s8 + $0x10] sm:$0xff]  }
 0x15f   : > { %v2579_v55 = vpack.c.bf16 %v3501_v48, %v3504_v49  ;;  %2835 = vmatprep.mubr.bf16.mxu0 %v2567_v52 }
 0x160   : > { %2844 = vmatpush3.bf16.msra.mxu0 %v3106_v38 }
 0x161   : > { %v2813_v60 = vpop.f32.mrb[28].mxu1  ;;  %2845 = vmatprep.subr.bf16.mxu0 %v3107_v53 }
 0x162   : > { %v1329_v62 = vadd.f32 %v2813_v60, %v3387_v3  ;;  %v1284_v63 = vpop.f32.mrb[29].mxu1  ;;  %v3139_v60 = vld [vmem:[%s3677_s8 + $0x18] sm:$0xff]  }
 0x163   : > { %v1327_v0 = vadd.f32 %v3387_v3, %v1284_v63  ;;  %v2814_v1 = vpop.f32.mrb[30].mxu1  ;;  %v3142_v63 = vld [vmem:[%s3677_s8 + $0x30] sm:$0xff]  }
 0x164   : > { %v3517_v2 = vadd.f32 %v2814_v1, %v3387_v3  ;;  %2846 = vmatpush3.bf16.msra.mxu0 %v3107_v53  ;;  %v1287_v4 = vpop.f32.mrb[31].mxu1  ;;  %v2542_v1 = vld [vmem:[%s3676_s7] ss:$0 sm:$0xff] }
 0x165   : > { %v2568_v5 = vpack.c.bf16 %v1329_v62, %v1327_v0  ;;  %v3520_v6 = vadd.f32 %v3387_v3, %v1287_v4  ;;  %2847 = vmatprep.subr.bf16.mxu0 %v3108_v61  ;;  %v3110_v3 = vld [vmem:[%s3673_s4 + $0x30] sm:$0xff]   ;;  %v3141_v62 = vld [vmem:[%s3677_s8 + $0x28] sm:$0xff]   ;;  %v3143_v0 = vld [vmem:[%s3677_s8 + $0x38] sm:$0xff]  }
 0x167   : > { %v2580_v10 = vpack.c.bf16 %v3517_v2, %v3520_v6  ;;  %2836 = vmatmul.mubr.bf16.gmra.mrb[20].mxu0 %v2568_v5 }
 0x168   : > { %2848 = vmatpush3.bf16.msra.mxu0 %v3108_v61  ;;  %2855 = vmatprep.mubr.bf16.mxu0 %v2569_v15  ;;  %v3115_v15 = vld [vmem:[%s3673_s4 + $0x98] sm:$0xff]   ;;  %v3140_v61 = vld [vmem:[%s3677_s8 + $0x20] sm:$0xff]  }
 0x169   : > { %2849 = vmatprep.subr.bf16.mxu0 %v3109_v9 }
 0x16c   : > { %2850 = vmatpush3.bf16.msra.mxu0 %v3109_v9 }
 0x16d   : > { %2851 = vmatprep.subr.bf16.mxu0 %v3110_v3 }
 0x170   : > { %2852 = vmatpush3.bf16.msra.mxu0 %v3110_v3 }
 0x171   : > { %2853 = vmatprep.subr.bf16.mxu0 %v3111_v18 }
 0x174   : > { %2854 = vmatpush3.bf16.msra.mxu0 %v3111_v18 }
 0x175   : > { %2863 = vmatprep.subr.bf16.mxu0 %v3112_v19 }
 0x177   : > { %2856 = vmatmul.mubr.bf16.vlgmr.msra.gmra.mrb[16].mxu0 %v2570_v28  ;;  %v3118_v28 = vld [vmem:[%s3673_s4 + $0xb0] sm:$0xff]  }
 0x178   : > { %2859 = vmatprep.mubr.bf16.mxu0 %v2571_v43  ;;  %2864 = vmatpush3.bf16.msra.mxu0 %v3112_v19  ;;  %v3135_v43 = vld [vmem:[%s3675_s6 + $0x38] sm:$0xff]  }
 0x179   : > { %2865 = vmatprep.subr.bf16.mxu0 %v3113_v8  ;;  %2925 = vmatprep.subr.bf16.mxu1 %v3135_v43 }
 0x17a   : > { %2926 = vmatpush3.bf16.msra.mxu1 %v3135_v43 }
 0x17c   : > { %2866 = vmatpush3.bf16.msra.mxu0 %v3113_v8 }
 0x17d   : > { %2867 = vmatprep.subr.bf16.mxu0 %v3114_v11 }
 0x17f   : > { %2860 = vmatmul.mubr.bf16.gmra.mrb[20].mxu0 %v2572_v58 }
 0x180   : > { %2868 = vmatpush3.bf16.msra.mxu0 %v3114_v11  ;;  %2879 = vmatprep.mubr.bf16.mxu0 %v2573_v17  ;;  %v3121_v17 = vld [vmem:[%s3673_s4 + $0xc8] sm:$0xff]  }
 0x181   : > { %2869 = vmatprep.subr.bf16.mxu0 %v3115_v15 }
 0x184   : > { %2870 = vmatpush3.bf16.msra.mxu0 %v3115_v15 }
 0x185   : > { %2871 = vmatprep.subr.bf16.mxu0 %v3116_v22 }
 0x188   : > { %2872 = vmatpush3.bf16.msra.mxu0 %v3116_v22 }
 0x189   : > { %2873 = vmatprep.subr.bf16.mxu0 %v3117_v25 }
 0x18c   : > { %2874 = vmatpush3.bf16.msra.mxu0 %v3117_v25 }
 0x18d   : > { %2875 = vmatprep.subr.bf16.mxu0 %v3118_v28 }
 0x190   : > { %2876 = vmatpush3.bf16.msra.mxu0 %v3118_v28 }
 0x191   : > { %2877 = vmatprep.subr.bf16.mxu0 %v3119_v13 }
 0x194   : > { %2878 = vmatpush3.bf16.msra.mxu0 %v3119_v13 }
 0x195   : > { %2887 = vmatprep.subr.bf16.mxu0 %v3120_v14 }
 0x197   : > { %2880 = vmatmul.mubr.bf16.vlgmr.msra.gmra.mrb[16].mxu0 %v2574_v30  ;;  %v3126_v30 = vld [vmem:[%s3673_s4 + $0xf0] sm:$0xff]  }
 0x198   : > { %2883 = vmatprep.mubr.bf16.mxu0 %v2575_v45  ;;  %2888 = vmatpush3.bf16.msra.mxu0 %v3120_v14  ;;  %v3136_v45 = vld [vmem:[%s3677_s8] sm:$0xff]  }
 0x199   : > { %2889 = vmatprep.subr.bf16.mxu0 %v3121_v17  ;;  %2935 = vmatprep.subr.bf16.mxu1 %v3136_v45 }
 0x19c   : > { %2890 = vmatpush3.bf16.msra.mxu0 %v3121_v17 }
 0x19d   : > { %2891 = vmatprep.subr.bf16.mxu0 %v3122_v36 }
 0x19f   : > { %2884 = vmatmul.mubr.bf16.gmra.mrb[20].mxu0 %v2576_v59 }
 0x1a0   : > { %2892 = vmatpush3.bf16.msra.mxu0 %v3122_v36  ;;  %2903 = vmatprep.mubr.bf16.mxu0 %v2577_v16 }
 0x1a1   : > { %2893 = vmatprep.subr.bf16.mxu0 %v3123_v39 }
 0x1a4   : > { %2894 = vmatpush3.bf16.msra.mxu0 %v3123_v39 }
 0x1a5   : > { %2895 = vmatprep.subr.bf16.mxu0 %v3124_v27 }
 0x1a8   : > { %2896 = vmatpush3.bf16.msra.mxu0 %v3124_v27 }
 0x1a9   : > { %2897 = vmatprep.subr.bf16.mxu0 %v3125_v29 }
 0x1ac   : > { %2898 = vmatpush3.bf16.msra.mxu0 %v3125_v29 }
 0x1ad   : > { %2899 = vmatprep.subr.bf16.mxu0 %v3126_v30 }
 0x1b0   : > { %2900 = vmatpush3.bf16.msra.mxu0 %v3126_v30 }
 0x1b1   : > { %2901 = vmatprep.subr.bf16.mxu0 %v3127_v41 }
 0x1b4   : > { %2902 = vmatpush3.bf16.msra.mxu0 %v3127_v41 }
 0x1b7   : > { %2904 = vmatmul.mubr.bf16.vlgmr.msra.gmra.mrb[16].mxu0 %v2578_v35  ;;  %v3137_v35 = vld [vmem:[%s3677_s8 + $0x8] sm:$0xff]  }
 0x1b8   : > { %2907 = vmatprep.mubr.bf16.mxu0 %v2579_v55 }
 0x1bf   : > { %2908 = vmatmul.mubr.bf16.gmra.mrb[20].mxu0 %v2580_v10 }
 0x28a   : > { %v2905_v54 = vpop.f32.mrb[16].mxu0 }
 0x28b   : > { %v1939_v56 = vadd.f32 %v2905_v54, %v2541_v51  ;;  %v1891_v57 = vpop.f32.mrb[17].mxu0  ;;  %v2551_v54 = vld [vmem:[%s3678_s9] ss:$0 sm:$0xff] }
 0x28c   : > { %v1937_v58 = vadd.f32 %v2541_v51, %v1891_v57  ;;  %v2906_v59 = vpop.f32.mrb[18].mxu0 }
 0x28d   : > { %v1940_v7 = vadd.f32 %v2906_v59, %v2541_v51  ;;  %v1894_v12 = vpop.f32.mrb[19].mxu0  ;;  %v1947_v20 = vmax.f32 %v1939_v56, 0.0 }
 0x28e   : > { %v1938_v16 = vadd.f32 %v2541_v51, %v1894_v12  ;;  %v1945_v23 = vmax.f32 %v1937_v58, 0.0 }
 0x28f   : > { %v1948_v21 = vmax.f32 %v1940_v7, 0.0 }
 0x290   : > { %v1946_v24 = vmax.f32 %v1938_v16, 0.0 }
 0x291   : > { %v1954_v26 = vpack.c.bf16 %v1948_v21, %v1947_v20 }
 0x292   : > { %v1953_v31 = vpack.c.bf16 %v1946_v24, %v1945_v23  ;;  %v2909_v32 = vpop.f32.mrb[20].mxu0 }
 0x293   : > { %v1943_v33 = vadd.f32 %v2909_v32, %v2541_v51  ;;  %v1907_v34 = vpop.f32.mrb[21].mxu0 }
 0x294   : > { %v1941_v37 = vadd.f32 %v2541_v51, %v1907_v34  ;;  %v2910_v38 = vpop.f32.mrb[22].mxu0  ;;  %2927 = vmatprep.mubr.bf16.mxu1 %v1953_v31 }
 0x295   : > { %v1944_v40 = vadd.f32 %v2910_v38, %v2541_v51  ;;  %v1910_v44 = vpop.f32.mrb[23].mxu0  ;;  %2928 = vmatmul.mubr.bf16.vlgmr.msra.gmra.mrb[32].mxu1 %v1954_v26  ;;  %v1951_v47 = vmax.f32 %v1943_v33, 0.0 }
 0x296   : > { %v1942_v46 = vadd.f32 %v2541_v51, %v1910_v44  ;;  %2936 = vmatpush3.bf16.msra.mxu1 %v3136_v45  ;;  %v1949_v52 = vmax.f32 %v1941_v37, 0.0 }
 0x297   : > { %v1952_v48 = vmax.f32 %v1944_v40, 0.0  ;;  %2937 = vmatprep.subr.bf16.mxu1 %v3137_v35 }
 0x298   : > { %v1950_v49 = vmax.f32 %v1942_v46, 0.0 }
 0x299   : > { %v1956_v53 = vpack.c.bf16 %v1952_v48, %v1951_v47 }
 0x29a   : > { %v1955_v55 = vpack.c.bf16 %v1950_v49, %v1949_v52  ;;  %2938 = vmatpush3.bf16.msra.mxu1 %v3137_v35 }
 0x29b   : > { %2939 = vmatprep.subr.bf16.mxu1 %v3138_v50 }
 0x29c   : > { %2931 = vmatprep.mubr.bf16.mxu1 %v1955_v55 }
 0x29d   : > { %2932 = vmatmul.mubr.bf16.gmra.mrb[36].mxu1 %v1956_v53 }
 0x29e   : > { %2940 = vmatpush3.bf16.msra.mxu1 %v3138_v50 }
 0x29f   : > { %2941 = vmatprep.subr.bf16.mxu1 %v3139_v60 }
 0x2a2   : > { %2942 = vmatpush3.bf16.msra.mxu1 %v3139_v60 }
 0x2a3   : > { %2943 = vmatprep.subr.bf16.mxu1 %v3140_v61 }
 0x2a6   : > { %2944 = vmatpush3.bf16.msra.mxu1 %v3140_v61 }
 0x2a7   : > { %2945 = vmatprep.subr.bf16.mxu1 %v3141_v62 }
 0x2aa   : > { %2946 = vmatpush3.bf16.msra.mxu1 %v3141_v62 }
 0x2ab   : > { %2947 = vmatprep.subr.bf16.mxu1 %v3142_v63 }
 0x2ae   : > { %2948 = vmatpush3.bf16.msra.mxu1 %v3142_v63 }
 0x2af   : > { %2949 = vmatprep.subr.bf16.mxu1 %v3143_v0 }
 0x2b2   : > { %2950 = vmatpush3.bf16.msra.mxu1 %v3143_v0 }
 0x368   : > { %v2929_v2 = vpop.f32.mrb[32].mxu1 }
 0x369   : > { %v2071_v4 = vadd.f32 %v2929_v2, %v2542_v1  ;;  %v2062_v5 = vpop.f32.mrb[33].mxu1 }
 0x36a   : > { %v2063_v6 = vadd.f32 %v2542_v1, %v2062_v5  ;;  %v2930_v9 = vpop.f32.mrb[34].mxu1 }
 0x36b   : > { %v2074_v10 = vadd.f32 %v2930_v9, %v2542_v1  ;;  %v2065_v3 = vpop.f32.mrb[35].mxu1  ;;  %v2095_v19 = vmax.f32 %v2071_v4, 0.0 }
 0x36c   : > { %v2066_v18 = vadd.f32 %v2542_v1, %v2065_v3  ;;  %v2093_v11 = vmax.f32 %v2063_v6, 0.0 }
 0x36d   : > { %v2096_v8 = vmax.f32 %v2074_v10, 0.0 }
 0x36e   : > { %v2094_v15 = vmax.f32 %v2066_v18, 0.0 }
 0x36f   : > { %v2102_v22 = vpack.c.bf16 %v2096_v8, %v2095_v19 }
 0x370   : > { %v2101_v25 = vpack.c.bf16 %v2094_v15, %v2093_v11  ;;  %v2933_v28 = vpop.f32.mrb[36].mxu1 }
 0x371   : > { %v2087_v13 = vadd.f32 %v2933_v28, %v2542_v1  ;;  %v2078_v14 = vpop.f32.mrb[37].mxu1 }
 0x372   : > { %v2079_v17 = vadd.f32 %v2542_v1, %v2078_v14  ;;  %v2934_v36 = vpop.f32.mrb[38].mxu1  ;;  %2951 = vmatprep.mubr.bf16.mxu1 %v2101_v25 }
 0x373   : > { %v2090_v39 = vadd.f32 %v2934_v36, %v2542_v1  ;;  %v2081_v27 = vpop.f32.mrb[39].mxu1  ;;  %2952 = vmatmul.mubr.bf16.vlgmr.msra.gmra.mrb[40].mxu1 %v2102_v22  ;;  %v2099_v30 = vmax.f32 %v2087_v13, 0.0 }
 0x374   : > { %v2082_v29 = vadd.f32 %v2542_v1, %v2081_v27  ;;  %v2097_v42 = vmax.f32 %v2079_v17, 0.0 }
 0x375   : > { %v2100_v41 = vmax.f32 %v2090_v39, 0.0 }
 0x376   : > { %v2098_v43 = vmax.f32 %v2082_v29, 0.0 }
 0x377   : > { %v2104_v45 = vpack.c.bf16 %v2100_v41, %v2099_v30 }
 0x378   : > { %v2103_v51 = vpack.c.bf16 %v2098_v43, %v2097_v42 }
 0x37a   : > { %2955 = vmatprep.mubr.bf16.mxu1 %v2103_v51 }
 0x37b   : > { %2956 = vmatmul.mubr.bf16.gmra.mrb[44].mxu1 %v2104_v45 }
 0x446   : > { %v2953_v56 = vpop.f32.mrb[40].mxu1 }
 0x447   : > { %v2219_v57 = vadd.f32 %v2953_v56, %v2551_v54  ;;  %v2210_v58 = vpop.f32.mrb[41].mxu1 }
 0x448   : > { %v2211_v59 = vadd.f32 %v2551_v54, %v2210_v58  ;;  %v2954_v7 = vpop.f32.mrb[42].mxu1 }
 0x449   : > { %2243 = vst [vmem:[%s467_s12 + $0x10] sm:$0xff] %v2219_v57  ;;  %v2222_v12 = vadd.f32 %v2954_v7, %v2551_v54  ;;  %v2213_v16 = vpop.f32.mrb[43].mxu1 }
 0x44a   : > { %2241 = vst [vmem:[%s467_s12] sm:$0xff] %v2211_v59  ;;  %v2214_v20 = vadd.f32 %v2551_v54, %v2213_v16 }
 0x44b   : > { %2244 = vst [vmem:[%s467_s12 + $0x18] sm:$0xff] %v2222_v12 }
 0x44c   : > { %2242 = vst [vmem:[%s467_s12 + $0x8] sm:$0xff] %v2214_v20 }
 0x44e   : > { %v2957_v21 = vpop.f32.mrb[44].mxu1 }
 0x44f   : > { %v2235_v23 = vadd.f32 %v2957_v21, %v2551_v54  ;;  %v2226_v24 = vpop.f32.mrb[45].mxu1 }
 0x450   : > { %v2227_v26 = vadd.f32 %v2551_v54, %v2226_v24  ;;  %v2958_v31 = vpop.f32.mrb[46].mxu1 }
 0x451   : > { %2247 = vst [vmem:[%s467_s12 + $0x30] sm:$0xff] %v2235_v23  ;;  %v2238_v32 = vadd.f32 %v2958_v31, %v2551_v54  ;;  %v2229_v33 = vpop.f32.mrb[47].mxu1 }
 0x452   : > { %2245 = vst [vmem:[%s467_s12 + $0x20] sm:$0xff] %v2227_v26  ;;  %v2230_v34 = vadd.f32 %v2551_v54, %v2229_v33 }
 0x453   : > { %2248 = vst [vmem:[%s467_s12 + $0x38] sm:$0xff] %v2238_v32 }
 0x454   : > { %2246 = vst [vmem:[%s467_s12 + $0x28] sm:$0xff] %v2230_v34 }
 0x455 PF: > { %s20_s15 = sadd.s32 1, %s3166_s15   ;;  %s3680_s13 = smov %s3162_s14 }
 0x456   : > { %p17_p5 = scmp.ge.s32.totalorder %s20_s15, 4   ;;  %s3681_s14 = smov %s3683_s16 }
 0x458   :  { %19 = sbr.rel (!%p17_p5) target bundleno = 2 (0x2), region = 101 }

</bundles_post_ra>
